<compile_context>
chip_gen: v7x
topology: tpu7x:2x2x1
jax: 0.10.0
libtpu: 0.0.40
codegen_flags: <defaults>
</compile_context>

<pallas_src>
import functools

import jax
import jax.numpy as jnp
from jax.experimental import pallas as pl
from jax.experimental.pallas import tpu as pltpu

_LOG2E = 1.4426950408889634
_STATS = 128  # lane-replicated softmax-statistics width (one full vreg of lanes)


def _pick_tile(dim, target, dtype=jnp.float32):
    """Largest dtype-aligned tile <= target that divides dim, else the full dim.

    Granularity is the sublane packing of the dtype: 8 rows for f32, 16 for
    bf16/f16, 32 for int8/fp8 (sub-32-bit dtypes pack rows along sublanes).
    """
    g = max(8, 32 // jnp.dtype(dtype).itemsize)
    if dim <= target:
        return dim
    t = (target // g) * g
    while t >= g:
        if dim % t == 0:
            return t
        t -= g
    # TODO(synk): pad-and-mask fallback instead of one huge block for awkward dims.
    return dim


def _flash_attn_kernel(q_ref, k_ref, v_ref, o_ref, m_sc, l_sc, acc_sc, *, scale_log2e):
    """One (batch*head, q-tile) program, iterated over kv tiles (last grid axis).

    Online softmax runs in the exp2 domain with the attention scale folded into
    the exponent constant: neither q nor the scores are ever rescaled on the VPU
    and each score costs a single (f32, v5e-safe) EUP exp2.
    """
    ki = pl.program_id(2)

    @pl.when(ki == 0)
    def _init():
        m_sc[...] = jnp.full_like(m_sc, -jnp.inf)
        l_sc[...] = jnp.zeros_like(l_sc)
        acc_sc[...] = jnp.zeros_like(acc_sc)

    q = q_ref[0]                              # (tq, Dh)  native dtype for the MXU
    k = k_ref[0]                              # (tkv, Dh)
    v = v_ref[0]                              # (tkv, Dh)

    # Unscaled logits: contraction over head_dim, f32 accumulation on the MXU.
    s = jax.lax.dot_general(q, k, (((1,), (1,)), ((), ())),
                            preferred_element_type=jnp.float32)   # (tq, tkv)

    m_prev = m_sc[...]                                            # (tq, _STATS)
    l_prev = l_sc[...]
    m_curr = jnp.max(s, axis=-1, keepdims=True)                   # (tq, 1)
    m_next = jnp.maximum(m_prev, m_curr)                          # lane-replicated
    m_col = m_next[:, :1]                                         # (tq, 1)

    # softmax(scale * s) == exp2(scale*log2e * (s - m)) / sum(...)
    alpha = jnp.exp2((m_prev[:, :1] - m_col) * scale_log2e)       # (tq, 1)
    p = jnp.exp2((s - m_col) * scale_log2e)                       # (tq, tkv) f32

    l_sc[...] = alpha * l_prev + jnp.sum(p, axis=-1, keepdims=True)
    acc_sc[...] = alpha * acc_sc[...] + jnp.dot(
        p.astype(v.dtype), v, preferred_element_type=jnp.float32)
    m_sc[...] = m_next

    @pl.when(ki == pl.num_programs(2) - 1)
    def _finalize():
        # Exact normalization: runs once per q tile, approx reciprocal buys nothing.
        o_ref[0] = (acc_sc[...] / l_sc[:, :1]).astype(o_ref.dtype)


def _merge_proj_kernel(att_ref, wt_ref, b_ref, o_ref, acc_sc):
    """out[b, rows, :] = sum_h attended[b*H+h, rows, :] @ W^T[h*Dh:(h+1)*Dh, :] + bias.

    Heads are the last ('arbitrary') grid axis, so the head-merge that a
    concat-then-project layout would need never touches HBM, and only a
    (Dh, E) slice of the weight is resident per step.
    """
    h = pl.program_id(2)

    @pl.when(h == 0)
    def _init():
        acc_sc[...] = jnp.zeros_like(acc_sc)

    acc_sc[...] += jnp.dot(att_ref[0], wt_ref[...],
                           preferred_element_type=jnp.float32)

    @pl.when(h == pl.num_programs(2) - 1)
    def _finalize():
        o_ref[0] = (acc_sc[...] + b_ref[...].astype(jnp.float32)).astype(o_ref.dtype)


def multi_head_attention_v2(query, key, value, proj_weight, proj_bias, *, num_heads,
                            q_tile=256, kv_tile=512, row_tile=256):
    """query: (B, Lq, E), key/value: (B, Lk, E), proj_weight: (E, E), proj_bias: (E,)."""
    B, Lq, E = query.shape
    Lk = key.shape[1]
    assert key.shape[1] == value.shape[1], "Key and value lengths must match"
    H = num_heads
    assert E % H == 0
    Dh = E // H
    scale_log2e = (Dh ** -0.5) * _LOG2E
    itemsize = jnp.dtype(query.dtype).itemsize

    # (B, L, E) -> (B*H, L, Dh): heads become a grid axis so every attention block
    # is lane-dense in head_dim.  These three split transposes are the only
    # wrapper-side layout passes left; the head merge on the way out is fused into
    # the projection kernel below.
    # TODO(synk): when Dh % 128 == 0 the splits can also be dropped by indexing the
    # head column straight out of (B, L, E) via the BlockSpec.
    q_bh = query.reshape(B, Lq, H, Dh).transpose(0, 2, 1, 3).reshape(B * H, Lq, Dh)
    k_bh = key.reshape(B, Lk, H, Dh).transpose(0, 2, 1, 3).reshape(B * H, Lk, Dh)
    v_bh = value.reshape(B, Lk, H, Dh).transpose(0, 2, 1, 3).reshape(B * H, Lk, Dh)

    tq = _pick_tile(Lq, q_tile, query.dtype)
    tkv = _pick_tile(Lk, kv_tile, key.dtype)
    n_q_tiles = Lq // tq
    grid = (B * H, n_q_tiles, Lk // tkv)   # bh & q-tile parallel (megacore), kv last

    attn_cost = pl.CostEstimate(
        flops=4 * B * H * Lq * Lk * Dh,                     # QK^T + PV matmuls
        transcendentals=B * H * Lq * Lk,                    # exp2 of the scores
        bytes_accessed=(B * H * Lq * Dh                     # q read
                        + 2 * n_q_tiles * B * H * Lk * Dh   # k+v re-streamed per q tile
                        + B * H * Lq * Dh) * itemsize,      # output write
    )

    attended = pl.pallas_call(
        functools.partial(_flash_attn_kernel, scale_log2e=scale_log2e),
        out_shape=jax.ShapeDtypeStruct((B * H, Lq, Dh), query.dtype),
        grid_spec=pltpu.PrefetchScalarGridSpec(
            num_scalar_prefetch=0,
            grid=grid,
            in_specs=[
                pl.BlockSpec((1, tq, Dh), lambda bh, qi, ki: (bh, qi, 0)),
                pl.BlockSpec((1, tkv, Dh), lambda bh, qi, ki: (bh, ki, 0)),
                pl.BlockSpec((1, tkv, Dh), lambda bh, qi, ki: (bh, ki, 0)),
            ],
            out_specs=pl.BlockSpec((1, tq, Dh), lambda bh, qi, ki: (bh, qi, 0)),
            scratch_shapes=[
                pltpu.VMEM((tq, _STATS), jnp.float32),   # running max m (lane-replicated)
                pltpu.VMEM((tq, _STATS), jnp.float32),   # running denominator l
                pltpu.VMEM((tq, Dh), jnp.float32),       # output accumulator
            ],
        ),
        compiler_params=pltpu.CompilerParams(
            dimension_semantics=("parallel", "parallel", "arbitrary"),
            vmem_limit_bytes=32 * 1024 * 1024,
        ),
        cost_estimate=attn_cost,
    )(q_bh, k_bh, v_bh)

    # Output projection with heads as the reduction axis; consumes the
    # (B*H, Lq, Dh) attention output in place (no merge transpose over HBM).
    # The E^2 weight transpose is tiny vs. activation traffic; cache proj_weight.T
    # outside the jitted path when weights are static to make it free.
    wt = proj_weight.T
    bias2d = proj_bias.reshape(1, E)
    tr = _pick_tile(Lq, row_tile, query.dtype)
    n_r_tiles = Lq // tr

    proj_cost = pl.CostEstimate(
        flops=2 * B * Lq * E * E,
        transcendentals=0,
        bytes_accessed=(B * Lq * E                  # attended read
                        + B * n_r_tiles * E * E     # W^T re-streamed per row tile
                        + B * Lq * E                # output write
                        + E) * itemsize,            # bias
    )

    out = pl.pallas_call(
        _merge_proj_kernel,
        out_shape=jax.ShapeDtypeStruct((B, Lq, E), query.dtype),
        grid_spec=pltpu.PrefetchScalarGridSpec(
            num_scalar_prefetch=0,
            grid=(B, n_r_tiles, H),
            in_specs=[
                pl.BlockSpec((1, tr, Dh), lambda b, r, h: (b * H + h, r, 0)),
                pl.BlockSpec((Dh, E), lambda b, r, h: (h, 0)),
                pl.BlockSpec((1, E), lambda b, r, h: (0, 0)),
            ],
            out_specs=pl.BlockSpec((1, tr, E), lambda b, r, h: (b, r, 0)),
            scratch_shapes=[pltpu.VMEM((tr, E), jnp.float32)],
        ),
        compiler_params=pltpu.CompilerParams(
            dimension_semantics=("parallel", "parallel", "arbitrary"),
            vmem_limit_bytes=32 * 1024 * 1024,
        ),
        cost_estimate=proj_cost,
    )(attended, wt, bias2d)

    return out


def _reference(query, key, value, proj_weight, proj_bias, *, num_heads):
    B, Lq, E = query.shape
    Lk = key.shape[1]
    Dh = E // num_heads
    scale = Dh ** (-0.5)
    q = query.reshape(B, Lq, num_heads, Dh).transpose(0, 2, 1, 3)
    k = key.reshape(B, Lk, num_heads, Dh).transpose(0, 2, 1, 3)
    v = value.reshape(B, Lk, num_heads, Dh).transpose(0, 2, 1, 3)
    s = jnp.einsum("bhqd,bhkd->bhqk", q, k) * scale
    w = jax.nn.softmax(s, axis=-1)
    o = jnp.einsum("bhqk,bhkd->bhqd", w, v).transpose(0, 2, 1, 3).reshape(B, Lq, E)
    return o @ proj_weight.T + proj_bias


if __name__ == "__main__":
    # Small shapes consistent with the module: batch=2, query len=8, key len=16,
    # embed=32, heads=4 (cross-attention path with Lq != Lk).
    B, Lq, Lk, E, H = 2, 8, 16, 32, 4

    key0 = jax.random.PRNGKey(0)
    kq, kk, kv, kw, kb = jax.random.split(key0, 5)

    query = jax.random.normal(kq, (B, Lq, E), dtype=jnp.float32)
    key_t = jax.random.normal(kk, (B, Lk, E), dtype=jnp.float32)
    value = jax.random.normal(kv, (B, Lk, E), dtype=jnp.float32)

    # nn.Linear(embed_dim, embed_dim) init: uniform(-1/sqrt(E), 1/sqrt(E))
    bound = 1.0 / (E ** 0.5)
    proj_weight = jax.random.uniform(kw, (E, E), minval=-bound, maxval=bound,
                                     dtype=jnp.float32)
    proj_bias = jax.random.uniform(kb, (E,), minval=-bound, maxval=bound,
                                   dtype=jnp.float32)

    out = multi_head_attention_v2(query, key_t, value, proj_weight, proj_bias,
                                  num_heads=H)
    out = jax.block_until_ready(out)

    ref = _reference(query, key_t, value, proj_weight, proj_bias, num_heads=H)
    assert out.shape == (B, Lq, E)
    # Margin covers MXU/VPU rounding differences vs. the XLA reference (which uses
    # default TPU matmul precision); the kernel normalization itself is exact.
    assert jnp.allclose(out, ref, atol=2e-3, rtol=2e-3), float(
        jnp.max(jnp.abs(out - ref)))

    print("KERNEL_OK")
</pallas_src>

<mosaic_0001>
module attributes {stable_mosaic.version = 11 : i64} {
  func.func @_flash_attn_kernel(%arg0: i32, %arg1: i32, %arg2: i32, %arg3: memref<1x8x8xf32, #tpu.memory_space<vmem>>, %arg4: memref<1x16x8xf32, #tpu.memory_space<vmem>>, %arg5: memref<1x16x8xf32, #tpu.memory_space<vmem>>, %arg6: memref<1x8x8xf32, #tpu.memory_space<vmem>>, %arg7: memref<8x128xf32, #tpu.memory_space<vmem>>, %arg8: memref<8x128xf32, #tpu.memory_space<vmem>>, %arg9: memref<8x8xf32, #tpu.memory_space<vmem>>) attributes {dimension_semantics = [#tpu.dimension_semantics<parallel>, #tpu.dimension_semantics<parallel>, #tpu.dimension_semantics<arbitrary>], iteration_bounds = array<i64: 8, 1, 1>, scalar_prefetch = 0 : i64, scratch_operands = 3 : i64, tpu.core_type = #tpu.core_type<tc>, window_params = [{transform_indices = @transform_0, window_bounds = array<i64: 1, 8, 8>}, {transform_indices = @transform_1, window_bounds = array<i64: 1, 16, 8>}, {transform_indices = @transform_2, window_bounds = array<i64: 1, 16, 8>}, {transform_indices = @transform_3, window_bounds = array<i64: 1, 8, 8>}]} {
    %c0_i32 = arith.constant 0 : i32
    %0 = arith.cmpi eq, %arg2, %c0_i32 : i32
    %1 = arith.extui %0 : i1 to i32
    %c0_i32_0 = arith.constant 0 : i32
    %2 = arith.cmpi ne, %1, %c0_i32_0 : i32
    scf.if %2 {
      %cst_28 = arith.constant 0xFF800000 : f32
      %44 = vector.broadcast %cst_28 : f32 to vector<8x128xf32>
      %c0_29 = arith.constant 0 : index
      %c0_30 = arith.constant 0 : index
      %45 = vector.load %arg7[%c0_29, %c0_30] : memref<8x128xf32, #tpu.memory_space<vmem>>, vector<8x128xf32>
      tpu.vector_store %arg7[%c0_29, %c0_30], %44 {strides = array<i32>} : memref<8x128xf32, #tpu.memory_space<vmem>>, vector<8x128xf32>,
      %cst_31 = arith.constant 0.000000e+00 : f32
      %46 = vector.broadcast %cst_31 : f32 to vector<8x128xf32>
      %c0_32 = arith.constant 0 : index
      %c0_33 = arith.constant 0 : index
      %47 = vector.load %arg8[%c0_32, %c0_33] : memref<8x128xf32, #tpu.memory_space<vmem>>, vector<8x128xf32>
      tpu.vector_store %arg8[%c0_32, %c0_33], %46 {strides = array<i32>} : memref<8x128xf32, #tpu.memory_space<vmem>>, vector<8x128xf32>,
      %cst_34 = arith.constant 0.000000e+00 : f32
      %48 = vector.broadcast %cst_34 : f32 to vector<8x8xf32>
      %c0_35 = arith.constant 0 : index
      %c0_36 = arith.constant 0 : index
      %49 = vector.load %arg9[%c0_35, %c0_36] : memref<8x8xf32, #tpu.memory_space<vmem>>, vector<8x8xf32>
      tpu.vector_store %arg9[%c0_35, %c0_36], %48 {strides = array<i32>} : memref<8x8xf32, #tpu.memory_space<vmem>>, vector<8x8xf32>,
    } else {
    }
    %c0 = arith.constant 0 : index
    %c0_1 = arith.constant 0 : index
    %c0_2 = arith.constant 0 : index
    %3 = vector.load %arg3[%c0, %c0_1, %c0_2] : memref<1x8x8xf32, #tpu.memory_space<vmem>>, vector<1x8x8xf32>
    %4 = vector.shape_cast %3 : vector<1x8x8xf32> to vector<8x8xf32>
    %c0_3 = arith.constant 0 : index
    %c0_4 = arith.constant 0 : index
    %c0_5 = arith.constant 0 : index
    %5 = vector.load %arg4[%c0_3, %c0_4, %c0_5] : memref<1x16x8xf32, #tpu.memory_space<vmem>>, vector<1x16x8xf32>
    %6 = vector.shape_cast %5 : vector<1x16x8xf32> to vector<16x8xf32>
    %c0_6 = arith.constant 0 : index
    %c0_7 = arith.constant 0 : index
    %c0_8 = arith.constant 0 : index
    %7 = vector.load %arg5[%c0_6, %c0_7, %c0_8] : memref<1x16x8xf32, #tpu.memory_space<vmem>>, vector<1x16x8xf32>
    %8 = vector.shape_cast %7 : vector<1x16x8xf32> to vector<16x8xf32>
    %cst = arith.constant dense<0.000000e+00> : vector<8x16xf32>
    %9 = tpu.matmul %4, %6, %cst {dimension_numbers = #tpu.dot_dimension_numbers<[1], [1], [0], [0], [0, 0, 1, 0], [], []>} : vector<8x8xf32>, vector<16x8xf32>, vector<8x16xf32> -> vector<8x16xf32>
    %c0_9 = arith.constant 0 : index
    %c0_10 = arith.constant 0 : index
    %10 = vector.load %arg7[%c0_9, %c0_10] : memref<8x128xf32, #tpu.memory_space<vmem>>, vector<8x128xf32>
    %c0_11 = arith.constant 0 : index
    %c0_12 = arith.constant 0 : index
    %11 = vector.load %arg8[%c0_11, %c0_12] : memref<8x128xf32, #tpu.memory_space<vmem>>, vector<8x128xf32>
    %cst_13 = arith.constant dense<0xFF800000> : vector<8xf32>
    %12 = vector.multi_reduction <maximumf>, %9, %cst_13 [1] : vector<8x16xf32> to vector<8xf32>
    %13 = vector.shape_cast %12 : vector<8xf32> to vector<8x1xf32>
    %14 = vector.broadcast %13 : vector<8x1xf32> to vector<8x128xf32>
    %15 = arith.maximumf %10, %14 : vector<8x128xf32>
    %16 = vector.extract_strided_slice %15 {offsets = [0, 0], sizes = [8, 1], strides = [1, 1]} : vector<8x128xf32> to vector<8x1xf32>
    %17 = vector.extract_strided_slice %10 {offsets = [0, 0], sizes = [8, 1], strides = [1, 1]} : vector<8x128xf32> to vector<8x1xf32>
    %18 = arith.subf %17, %16 : vector<8x1xf32>
    %cst_14 = arith.constant 0.510069728 : f32
    %19 = vector.broadcast %cst_14 : f32 to vector<8x1xf32>
    %20 = arith.mulf %18, %19 : vector<8x1xf32>
    %21 = math.exp2 %20 : vector<8x1xf32>
    %22 = vector.broadcast %16 : vector<8x1xf32> to vector<8x16xf32>
    %23 = arith.subf %9, %22 : vector<8x16xf32>
    %cst_15 = arith.constant 0.510069728 : f32
    %24 = vector.broadcast %cst_15 : f32 to vector<8x16xf32>
    %25 = arith.mulf %23, %24 : vector<8x16xf32>
    %26 = math.exp2 %25 : vector<8x16xf32>
    %27 = vector.broadcast %21 : vector<8x1xf32> to vector<8x128xf32>
    %28 = arith.mulf %27, %11 : vector<8x128xf32>
    %cst_16 = arith.constant dense<0.000000e+00> : vector<8xf32>
    %29 = vector.multi_reduction <add>, %26, %cst_16 [1] : vector<8x16xf32> to vector<8xf32>
    %30 = vector.shape_cast %29 : vector<8xf32> to vector<8x1xf32>
    %31 = vector.broadcast %30 : vector<8x1xf32> to vector<8x128xf32>
    %32 = arith.addf %28, %31 : vector<8x128xf32>
    %c0_17 = arith.constant 0 : index
    %c0_18 = arith.constant 0 : index
    %33 = vector.load %arg8[%c0_17, %c0_18] : memref<8x128xf32, #tpu.memory_space<vmem>>, vector<8x128xf32>
    tpu.vector_store %arg8[%c0_17, %c0_18], %32 {strides = array<i32>} : memref<8x128xf32, #tpu.memory_space<vmem>>, vector<8x128xf32>,
    %c0_19 = arith.constant 0 : index
    %c0_20 = arith.constant 0 : index
    %34 = vector.load %arg9[%c0_19, %c0_20] : memref<8x8xf32, #tpu.memory_space<vmem>>, vector<8x8xf32>
    %35 = vector.broadcast %21 : vector<8x1xf32> to vector<8x8xf32>
    %36 = arith.mulf %35, %34 : vector<8x8xf32>
    %cst_21 = arith.constant dense<0.000000e+00> : vector<8x8xf32>
    %37 = tpu.matmul %26, %8, %cst_21 {dimension_numbers = #tpu.dot_dimension_numbers<[1], [0], [0], [1], [0, 0, 1, 1], [], []>} : vector<8x16xf32>, vector<16x8xf32>, vector<8x8xf32> -> vector<8x8xf32>
    %38 = arith.addf %36, %37 : vector<8x8xf32>
    %c0_22 = arith.constant 0 : index
    %c0_23 = arith.constant 0 : index
    %39 = vector.load %arg9[%c0_22, %c0_23] : memref<8x8xf32, #tpu.memory_space<vmem>>, vector<8x8xf32>
    tpu.vector_store %arg9[%c0_22, %c0_23], %38 {strides = array<i32>} : memref<8x8xf32, #tpu.memory_space<vmem>>, vector<8x8xf32>,
    %c0_24 = arith.constant 0 : index
    %c0_25 = arith.constant 0 : index
    %40 = vector.load %arg7[%c0_24, %c0_25] : memref<8x128xf32, #tpu.memory_space<vmem>>, vector<8x128xf32>
    tpu.vector_store %arg7[%c0_24, %c0_25], %15 {strides = array<i32>} : memref<8x128xf32, #tpu.memory_space<vmem>>, vector<8x128xf32>,
    %c0_i32_26 = arith.constant 0 : i32
    %41 = arith.cmpi eq, %arg2, %c0_i32_26 : i32
    %42 = arith.extui %41 : i1 to i32
    %c0_i32_27 = arith.constant 0 : i32
    %43 = arith.cmpi ne, %42, %c0_i32_27 : i32
    scf.if %43 {
      %c0_28 = arith.constant 0 : index
      %c0_29 = arith.constant 0 : index
      %44 = vector.load %arg9[%c0_28, %c0_29] : memref<8x8xf32, #tpu.memory_space<vmem>>, vector<8x8xf32>
      %c0_30 = arith.constant 0 : index
      %c0_31 = arith.constant 0 : index
      %45 = vector.load %arg8[%c0_30, %c0_31] : memref<8x128xf32, #tpu.memory_space<vmem>>, vector<8x1xf32>
      %46 = vector.broadcast %45 : vector<8x1xf32> to vector<8x8xf32>
      %47 = arith.divf %44, %46 : vector<8x8xf32>
      %c0_32 = arith.constant 0 : index
      %c0_33 = arith.constant 0 : index
      %c0_34 = arith.constant 0 : index
      %48 = vector.load %arg6[%c0_32, %c0_33, %c0_34] : memref<1x8x8xf32, #tpu.memory_space<vmem>>, vector<1x8x8xf32>
      %49 = vector.shape_cast %48 : vector<1x8x8xf32> to vector<8x8xf32>
      %50 = vector.shape_cast %47 : vector<8x8xf32> to vector<1x8x8xf32>
      tpu.vector_store %arg6[%c0_32, %c0_33, %c0_34], %50 {strides = array<i32>} : memref<1x8x8xf32, #tpu.memory_space<vmem>>, vector<1x8x8xf32>,
    } else {
    }
    return
  }
  func.func @transform_0(%arg0: i32, %arg1: i32, %arg2: i32) -> (i32, i32, i32) {
    %c0_i32 = arith.constant 0 : i32
    %c0_i32_0 = arith.constant 0 : i32
    return %arg0, %arg1, %c0_i32 : i32, i32, i32
  }
  func.func @transform_1(%arg0: i32, %arg1: i32, %arg2: i32) -> (i32, i32, i32) {
    %c0_i32 = arith.constant 0 : i32
    %c0_i32_0 = arith.constant 0 : i32
    return %arg0, %arg2, %c0_i32 : i32, i32, i32
  }
  func.func @transform_2(%arg0: i32, %arg1: i32, %arg2: i32) -> (i32, i32, i32) {
    %c0_i32 = arith.constant 0 : i32
    %c0_i32_0 = arith.constant 0 : i32
    return %arg0, %arg2, %c0_i32 : i32, i32, i32
  }
  func.func @transform_3(%arg0: i32, %arg1: i32, %arg2: i32) -> (i32, i32, i32) {
    %c0_i32 = arith.constant 0 : i32
    %c0_i32_0 = arith.constant 0 : i32
    return %arg0, %arg1, %c0_i32 : i32, i32, i32
  }
}

</mosaic_0001>

<bundles_post_ra>
// kernel: tpu_custom_call.1
= control target key start
LH: loop header
LB: loop body
LE: loop exit
PB: predicated region body
PF: predicated region fallthrough
CT: control target
= control target key end

     0   :  { %8 = vsyncpa [#allocation6], 0  ;;  %s955_s0 = inlined_call_operand.vmem [shape: f32[8,8,8], index: 0, kind: input, shape index: {}]   ;;  %s956_s1 = inlined_call_operand.vmem [shape: f32[8,16,8], index: 1, kind: input, shape index: {}]   ;;  %s957_s2 = inlined_call_operand.vmem [shape: f32[8,16,8], index: 2, kind: input, shape index: {}]   ;;  %s958_s3 = inlined_call_operand.hbm [shape: f32[8,8,8], index: 3, kind: output, shape index: {}]  }
   0x1   :  { %10 = vsyncpa [#allocation6 + $0x1], 0  ;;  %s828_s12 = smov 0   ;;  %s830_s13 = smov 0  }
   0x2   :  { %s832_s14 = smov 0   ;;  %s834_s15 = smov 0  }
   0x3   :  { %s836_s16 = smov 0   ;;  %s838_s17 = smov 0  }
   0x4 LB: > { %s608_s18 = sadd.s32 4294967295, %s801_s17   ;;  %s609_s19 = sadd.s32 4294967294, %s801_s17   ;;  %s801_s17 = sphi %s838_s17, %s16_s17   ;;  %s797_s16 = sphi %s836_s16, %s965_s16   ;;  %s793_s15 = sphi %s834_s15, %s964_s15   ;;  %s789_s14 = sphi %s832_s14, %s963_s14   ;;  %s785_s13 = sphi %s830_s13, %s962_s13   ;;  %s781_s12 = sphi %s828_s12, %s961_s12  }
   0x5   : > { %s35_s20 = sadd.s32 1, %s797_s16  ;;  %s128_s21 = sadd.s32 1, %s789_s14 }
   0x6   : > { %p37_p0 = scmp.ge.s32.totalorder %s35_s20, 8  ;;  %p138_p1 = scmp.ne.s32.totalorder %s789_s14, %s785_s13 }
   0x7   : > { %p139_p2 = scmp.eq.s32.totalorder %s608_s18, 7  ;;  %p144_p3 = scmp.ne.s32.totalorder %s785_s13, %s781_s12 }
   0x8   : > { %s967_s20 = smov (%p37_p0, %s35_s20), 0  ;;  %p145_p5 = scmp.eq.s32.totalorder %s609_s19, 7 }
   0x9   : > { %p868_p4 = por %p139_p2, %p138_p1  ;;  %s123_s23 = ssub.s32 %s797_s16, %s967_s20 }
   0xa   : > { %p612_p6 = scmp.ge.s32.totalorder %s801_s17, 1  ;;  %p126_p7 = scmp.eq.s32.totalorder %s123_s23, 0 }
   0xb   : > { %p875_p8 = por %p145_p5, %p144_p3  ;;  %p199_p9 = scmp.lt.s32.totalorder %s801_s17, 9 }
   0xc   : > { %s881_s25 = scalar_select %p126_p7, %s789_s14, %s128_s21  }
   0xd   : > { %p200_p10 = pnand %p612_p6, %p199_p9 }
   0xe   : > { %p243_p11 = scmp.lt.s32.totalorder (!%p200_p10), %s793_s15, 7  ;;  %vm276_vm0 = vcmask (!%p200_p10), 64512   ;;  %v803_v0 = vmov (!%p200_p10), 0.0|0.0   ;;  %v804_v1 = vmov (!%p200_p10), 0.0   ;;  %vm805_vm1 = vmmov (!%p200_p10), 0   ;;  %s240_s11 = sand.u32 (!%p200_p10), 1, %s785_s13  }
   0xf   : > { %203 = sbr.rel (%p200_p10) target bundleno = 840 (0x348), region = 32  ;;  %649 = vmatprep.subr.bf16.mxu0 (!%p200_p10), %v803_v0  ;;  %277 = vst.msk [vmem:[#allocation4] sm:$0xff] (!%p200_p10), %vm276_vm0, %v804_v1  ;;  %639 = vmatprep.mubr.msk.f32.mxu0 (!%p200_p10), %vm805_vm1, %v804_v1  ;;  %vm651_vm2 = vmpackc.low (!%p200_p10), %vm276_vm0, %vm276_vm0  ;;  %v806_v6 = vmov (!%p200_p10), 0   ;;  %vm365_vm3 = vcmask (!%p200_p10), 130048   ;;  %s613_s18 = sshll.u32 (!%p200_p10), %s240_s11, 3 }
  0x10   : > { %653 = vmatprep.subr.bf16.mxu1 (!%p200_p10), %v803_v0  ;;  %646 = vmatprep.mubr.msk.f32.mxu1 (!%p200_p10), %vm805_vm1, %v804_v1  ;;  %s624_s19 = sshll.u32 (!%p200_p10), %s793_s15, 7  ;;  %s242_s21 = scalar_lea.vmem (!%p200_p10), [#allocation5], %s613_s18 }
  0x11   : > { %715 = vset.pattern.permute.xlu0 (!%p200_p10), %v806_v6  ;;  %716 = vset.pattern.permute.xlu1 (!%p200_p10), %v806_v6  ;;  %s498_s23 = sshll.u32 (!%p200_p10), %s242_s21, 4  ;;  %s907_s28 = scalar_lea.hbm (!%p200_p10), %s958_s3, %s624_s19  ;;  %s909_s23 = int_to_ptr.vmem [resolvable:$true] %s498_s23 }
  0x12   : > { %s484_s29 = scalar_lea.sflag (!%p200_p10), [#allocation6], %s240_s11 }
  0x16   : > { %s244_s26 = scalar_select %p243_p11, %s793_s15, 7  ;;  %v392_v26 = vld [vmem:[#allocation4] sm:$0xff] }
  0x17   : > { %s807_s15 = smov [#allocation5]  }
  0x18   : > { %s627_s27 = sshll.u32 %s244_s26, 4  ;;  %s614_s4 = sshll.u32 %s244_s26, 3 }
  0x19   : > { %s258_s30 = scalar_lea.vmem %s956_s1, %s627_s27  ;;  %s249_s7 = scalar_lea.vmem %s955_s0, %s614_s4 }
  0x1a   : > { %v279_v2 = vld [vmem:[%s258_s30] sm:$0xff]  ;;  %v280_v3 = vld [vmem:[%s258_s30 + $0x8] sm:$0xff]  ;;  %s268_s10 = scalar_lea.vmem %s957_s2, %s627_s27  ;;  %s723_s30 = scalar_lea.vmem %s909_s23, 128 }
  0x1b   : > { %v650_v4 = vpack.c.bf16 %v280_v3, %v279_v2  ;;  %v278_v5 = vld [vmem:[%s249_s7] sm:$0xff]  ;;  %v282_v12 = vld [vmem:[%s268_s10 + $0x8] sm:$0xff]  ;;  %p724_p12 = scmp.ne.s32.totalorder %s909_s23, %s723_s30  ;;  %s727_s4 = sshll.u32 %s807_s15, 4  ;;  %s728_s4 = int_to_ptr.vmem [resolvable:$false] %s727_s4 }
  0x1c   : > { %v281_v11 = vld [vmem:[%s268_s10] sm:$0xff]  ;;  %s729_s5 = scalar_lea.vmem %s728_s4, 256  ;;  %p730_p1 = scmp.lt.s32.totalorder %s909_s23, %s728_s4 }
  0x1d   : > { %652 = vmatpush3.bf16.xpose.msk.msra.mxu0 %vm651_vm2, %v650_v4  ;;  %v654_v13 = vpack.c.bf16 %v282_v12, %v281_v11  ;;  %p725_p13 = pnand %p724_p12, %p868_p4  ;;  %p731_p2 = scmp.lt.s32.totalorder %s729_s5, %s723_s30 }
  0x1f   : > { %655 = vmatpush3.bf16.msra.mxu1 %v654_v13  ;;  %p726_p0 = pneg %p725_p13  ;;  %p732_p3 = por %p731_p2, %p730_p1 }
  0x21   : > { %p733_p5 = pnand %p732_p3, %p726_p0 }
  0x24   : > { %640 = vmatmul.mubr.msk.f32.vlgmr.msra.gmra.mrb[0].mxu0 %vm276_vm0, %v278_v5 }
  0xf7   : > { %v359_v7 = vpop.f32.mrb[0].mxu0 }
  0xf8   : > { %v641_v8 = vpop.f32.mrb[1].mxu0  ;;  %v366_v9 = vsel %vm365_vm3, %v359_v7, -inf }
  0xf9   : > { %367 = vmax.xlane.f32.xlu0 %v366_v9 }
 0x186   : > { %v368_v10 = vpop.xlane.xlu0 %367 }
 0x187   : > { %375 = vperm.xlu0 %715, %v368_v10   ;;  %v370_v18 = vsub.f32 -inf, %v368_v10 }
 0x189   : > { %v371_v20 = vmul.f32 0.5100697, %v370_v18 }
 0x206   : > { %v376_v14 = vpop.permute.xlu0 %375 }
 0x207   : > { %v378_v15 = vsub.f32 %v359_v7, %v376_v14 }
 0x209   : > { %v379_v16 = vmul.f32 0.5100697, %v378_v15 }
 0x20b   : > { %717 = vpow2.f32 %v379_v16 }
 0x20c   : > { %719 = vpow2.f32 %v371_v20 }
 0x215   : > { %v718_v17 = vpop.eup %717 }
 0x216   : > { %647 = vmatmul.mubr.msk.f32.vlgmr.msra.gmra.mrb[0].mxu1 %vm365_vm3, %v718_v17  ;;  %v387_v19 = vsel %vm365_vm3, %v718_v17, 0.0  ;;  %v720_v21 = vpop.eup %719 }
 0x217   : > { %388 = vadd.xlane.f32.xlu1 %v387_v19 }
 0x228   : > { %383 = vperm.xlu1 %716, %v720_v21  }
 0x2a4   : > { %v389_v22 = vpop.xlane.xlu1 %388 }
 0x2a8   : > { %v384_v23 = vpop.permute.xlu1 %383 }
 0x2a9   : > { %v386_v24 = vmul.f32 0.0, %v384_v23  ;;  %v393_v27 = vmul.f32 %v392_v26, %v384_v23 }
 0x2ab   : > { %v390_v25 = vadd.f32 %v389_v22, %v386_v24 }
 0x2ad   : > { %477 = vperm.xlu1 %716, %v390_v25  }
 0x2e9   : > { %v463_v28 = vpop.f32.mrb[0].mxu1 }
 0x2ea   : > { %v467_v29 = vadd.f32 %v463_v28, %v393_v27  ;;  %v648_v30 = vpop.f32.mrb[1].mxu1 }
 0x2ec   : > { %468 = vst.msk [vmem:[#allocation4] sm:$0xff] %vm276_vm0, %v467_v29 }
 0x2f3   : > { %v473_v33 = vld [vmem:[#allocation4] sm:$0xff] }
 0x32c   : > { %v478_v31 = vpop.permute.xlu1 %477 }
 0x32d   : > { %721 = vrcp.f32 %v478_v31 }
 0x337   : > { %v722_v32 = vpop.eup %721 }
 0x338   : > { %v481_v34 = vmul.f32 %v722_v32, %v473_v33 }
 0x33a   : > { %482 = vst.msk [vmem:[%s242_s21] sm:$0xff] %vm276_vm0, %v481_v34 }
 0x33b   : > { %736 = shalt.err (!%p733_p5)
}
 0x33c   : > { %s737_s6 = scalar_lea.hbm %s907_s28, 128  ;;  %s741_s9 = scalar_lea.hbm %s958_s3, 1024 }
 0x33d   : > { %p738_p6 = scmp.ne.s32.totalorder %s907_s28, %s737_s6  ;;  %p742_p10 = scmp.lt.u32.totalorder %s907_s28, %s958_s3 }
 0x33e   : > { %p743_p11 = scmp.lt.u32.totalorder %s741_s9, %s737_s6  ;;  %p745_p13 = scmp.lt.u32.totalorder %s737_s6, %s907_s28 }
 0x33f   : > { %p739_p7 = pnand %p738_p6, %p868_p4 }
 0x340   : > { %p744_p12 = por %p743_p11, %p742_p10 }
 0x341   : > { %p740_p9 = pneg %p739_p7 }
 0x342   : > { %p746_p0 = por %p745_p13, %p744_p12 }
 0x344   : > { %p747_p1 = pnand %p746_p0, %p740_p9 }
 0x346   : > { %750 = shalt.err (!%p747_p1)
}
 0x347   : > { %656 = dma.vmem_to_hbm [thread:$0]  (%p868_p4), %s909_s23, 128, %s907_s28, %s484_s29  }
 0x348 PF: > { %p662_p2 = scmp.ge.s32.totalorder %s801_s17, 2  ;;  %s510_s18 = sand.u32 1, %s781_s12  }
 0x349   : > { %s511_s19 = scalar_lea.sflag [#allocation6], %s510_s18 }
 0x34a   : > { %p659_p3 = pnand %p662_p2, %p875_p8 }
 0x34c   : > { %776 = dma.done.wait (!%p659_p3), %s511_s19, 128  }
 0x34d   : > { %778 = vsyncadd (!%p659_p3), %s511_s19, 4294967168  ;;  %s16_s17 = sadd.s32 1, %s801_s17   ;;  %s961_s12 = smov %s785_s13 }
 0x34e   : > { %p13_p5 = scmp.ge.s32.totalorder %s16_s17, 10   ;;  %s962_s13 = smov %s789_s14 }
 0x34f   : > { %s963_s14 = smov %s881_s25  ;;  %s964_s15 = smov %s797_s16 }
 0x350   : > { %s965_s16 = smov %s967_s20  ;;  %15 = sbr.rel (!%p13_p5) target bundleno = 4 (0x4), region = 81 }
 0x357   :  { %516 = vsyncpa [#allocation6], 1 }
 0x358   :  { %518 = vsyncpa [#allocation6 + $0x1], 1 }

</bundles_post_ra>
